<compile_context>
chip_gen: v6e
topology: v6e:2x2x1
jax: 0.10.0
libtpu: 0.0.40
codegen_flags: <defaults>
</compile_context>

<pallas_src>
import functools

import jax
import jax.numpy as jnp
from jax import lax
from jax.experimental import pallas as pl
from jax.experimental.pallas import tpu as pltpu


def _projection_kernel(logits_ref, cols_ref, w1_ref, b1_ref, w2_ref, b2_ref,
                       cw_ref, ens_ref, sp_ref, *, bt):
    """One batch block per grid step, transposed ("pixels on lanes") layout.

    logits_ref : (bt, C,  HW)   f32
    cols_ref   : (bt, 9*Cin, HW) bf16   (im2col of the padded input, transposed)
    w1_ref     : (Cmid, 9*Cin)  bf16    (3x3 conv weights, flattened, transposed)
    b1_ref     : (Cmid, 1)      f32
    w2_ref     : (C, Cmid)      bf16    (1x1 conv weights, transposed)
    b2_ref     : (C, 1)         f32
    cw_ref     : (C, 1)         f32     (per-class ensemble weights)
    ens_ref    : (bt, C, HW)    f32     output: weighted ensemble
    sp_ref     : (bt, C, HW)    f32     output: CPM feature (spatial priors)
    """
    w1 = w1_ref[...]            # (Cmid, 9*Cin) bf16
    w2 = w2_ref[...]            # (C, Cmid)     bf16
    b1 = b1_ref[...]            # (Cmid, 1)     f32
    b2 = b2_ref[...]            # (C, 1)        f32
    cw = cw_ref[...]            # (C, 1)        f32

    for i in range(bt):
        cols = cols_ref[i]      # (9*Cin, HW) bf16

        # 3x3 conv as a single im2col matmul: (Cmid, 9*Cin) @ (9*Cin, HW).
        # N = HW (full MXU / lane width); f32 accumulation on the MXU.
        h = jnp.dot(w1, cols, preferred_element_type=jnp.float32) + b1
        h = jnp.maximum(h, 0.0)                                  # ReLU (f32, VPU)

        # 1x1 conv == channel matmul: (C, Cmid) @ (Cmid, HW).
        sp = jnp.dot(w2, h.astype(jnp.bfloat16),
                     preferred_element_type=jnp.float32) + b2    # (C, HW) f32

        # Weighted ensemble, lane-dense elementwise + lane-dense stores.
        ens_ref[i] = logits_ref[i] + cw * sp
        sp_ref[i] = sp


def projection_module_forward(logits_nchw, x_nchw, params, *, batch_block=None):
    """logits_nchw: (B, C, H, W); x_nchw: (B, Cin, H, W). Returns dict of NCHW arrays."""
    B, C, H, W = logits_nchw.shape
    Cin = x_nchw.shape[1]
    Cmid = params["w1"].shape[-1]
    HW = H * W
    K9 = 9 * Cin

    if batch_block is None:
        # Keep >=2 parallel grid steps (v7x has 2 TensorCores) while collapsing
        # larger batches into bigger blocks to amortize per-step overhead.
        batch_block = max(1, B // 2)
    bt = batch_block
    grid = (pl.cdiv(B, bt),)

    # --- im2col in the transposed layout: (B, 9*Cin, H*W), bf16 MXU operand ---
    # TODO(synk): for segmentation-sized H*W, tile the HW axis (with a +/-1 halo
    # staged in-kernel) instead of materializing full-image im2col in HBM, and
    # size tiles for v7x's 64 MiB VMEM.
    x_pad = jnp.pad(x_nchw, ((0, 0), (0, 0), (1, 1), (1, 1)))
    cols = jnp.concatenate(
        [x_pad[:, :, dy:dy + H, dx:dx + W].reshape(B, Cin, HW)
         for dy in range(3) for dx in range(3)],
        axis=1).astype(jnp.bfloat16)                             # (B, 9*Cin, HW)

    # Weights in the matching transposed layout.
    w1_t = jnp.transpose(params["w1"], (3, 0, 1, 2)).reshape(Cmid, K9)
    w1_t = w1_t.astype(jnp.bfloat16)                             # (Cmid, 9*Cin)
    w2_t = jnp.transpose(params["w2"], (1, 0)).astype(jnp.bfloat16)  # (C, Cmid)
    b1 = params["b1"].reshape(Cmid, 1).astype(jnp.float32)
    b2 = params["b2"].reshape(C, 1).astype(jnp.float32)
    cw = params["cls_w"].reshape(C, 1).astype(jnp.float32)

    # Free reshape of contiguous NCHW -> (B, C, HW): lane axis = HW.
    logits_f = logits_nchw.reshape(B, C, HW)

    kernel = functools.partial(_projection_kernel, bt=bt)

    out_shapes = (
        jax.ShapeDtypeStruct((B, C, HW), jnp.float32),  # weighted_ensemble
        jax.ShapeDtypeStruct((B, C, HW), jnp.float32),  # CPM_feature
    )

    grid_spec = pltpu.PrefetchScalarGridSpec(
        num_scalar_prefetch=0,
        grid=grid,
        in_specs=[
            pl.BlockSpec((bt, C, HW), lambda i: (i, 0, 0)),    # logits (f32)
            pl.BlockSpec((bt, K9, HW), lambda i: (i, 0, 0)),   # im2col (bf16)
            pl.BlockSpec((Cmid, K9), lambda i: (0, 0)),        # w1^T (bf16)
            pl.BlockSpec((Cmid, 1), lambda i: (0, 0)),         # b1
            pl.BlockSpec((C, Cmid), lambda i: (0, 0)),         # w2^T (bf16)
            pl.BlockSpec((C, 1), lambda i: (0, 0)),            # b2
            pl.BlockSpec((C, 1), lambda i: (0, 0)),            # class weights
        ],
        out_specs=[
            pl.BlockSpec((bt, C, HW), lambda i: (i, 0, 0)),
            pl.BlockSpec((bt, C, HW), lambda i: (i, 0, 0)),
        ],
    )

    ens_f, sp_f = pl.pallas_call(
        kernel,
        out_shape=out_shapes,
        grid_spec=grid_spec,
        compiler_params=pltpu.CompilerParams(
            dimension_semantics=("parallel",)),
    )(logits_f, cols, w1_t, b1, w2_t, b2, cw)

    return {
        "weighted_ensemble": ens_f.reshape(B, C, H, W),
        "CPM_feature": sp_f.reshape(B, C, H, W),
    }


def init_params(key, num_classes=4, in_channels=21, mid=32):
    """Deterministic synthetic parameter init (shapes match the PyTorch module)."""
    k1, k2, k3, k4 = jax.random.split(key, 4)
    w1 = jax.random.normal(k1, (3, 3, in_channels, mid), jnp.float32) * 0.1   # HWIO
    b1 = jax.random.normal(k2, (1, mid), jnp.float32) * 0.01
    w2 = jax.random.normal(k3, (mid, num_classes), jnp.float32) * 0.1
    b2 = jax.random.normal(k4, (1, num_classes), jnp.float32) * 0.01
    cls_w = jnp.full((1, num_classes), 1.0, jnp.float32)  # torch.full((1,C,1,1), 1.0)
    return {"w1": w1, "b1": b1, "w2": w2, "b2": b2, "cls_w": cls_w}


def _reference_forward(logits_nchw, x_nchw, params):
    """Pure-JAX f32 reference (NCHW convs) for correctness checking."""
    sp = lax.conv_general_dilated(
        x_nchw, params["w1"], window_strides=(1, 1), padding="SAME",
        dimension_numbers=("NCHW", "HWIO", "NCHW"))
    sp = sp + params["b1"].reshape(1, -1, 1, 1)
    sp = jnp.maximum(sp, 0.0)
    sp = jnp.einsum("bmhw,mc->bchw", sp, params["w2"]) + params["b2"].reshape(1, -1, 1, 1)
    ens = logits_nchw + params["cls_w"].reshape(1, -1, 1, 1) * sp
    return {"weighted_ensemble": ens, "CPM_feature": sp}


if __name__ == "__main__":
    B, C, Cin, H, W = 2, 4, 21, 16, 16

    key = jax.random.PRNGKey(0)
    k_logits, k_x, k_params = jax.random.split(key, 3)

    # PyTorch-native NCHW inputs.
    logits_nchw = jax.random.normal(k_logits, (B, C, H, W), jnp.float32)
    x_nchw = jax.random.normal(k_x, (B, Cin, H, W), jnp.float32)

    params = init_params(k_params, num_classes=C, in_channels=Cin, mid=32)

    out = projection_module_forward(logits_nchw, x_nchw, params)
    jax.block_until_ready(out)

    ref = _reference_forward(logits_nchw, x_nchw, params)
    # bf16 MXU operands (f32 accumulation) -> relaxed tolerances vs the f32 ref.
    assert jnp.allclose(out["weighted_ensemble"], ref["weighted_ensemble"],
                        atol=2e-2, rtol=2e-2)
    assert jnp.allclose(out["CPM_feature"], ref["CPM_feature"],
                        atol=2e-2, rtol=2e-2)

    print("KERNEL_OK")
</pallas_src>

<mosaic_0001>
module attributes {stable_mosaic.version = 11 : i64} {
  func.func @_projection_kernel(%arg0: i32, %arg1: memref<1x4x256xf32, #tpu.memory_space<vmem>>, %arg2: memref<1x189x256xbf16, #tpu.memory_space<vmem>>, %arg3: memref<32x189xbf16, #tpu.memory_space<vmem>>, %arg4: memref<32x1xf32, #tpu.memory_space<vmem>>, %arg5: memref<4x32xbf16, #tpu.memory_space<vmem>>, %arg6: memref<4x1xf32, #tpu.memory_space<vmem>>, %arg7: memref<4x1xf32, #tpu.memory_space<vmem>>, %arg8: memref<1x4x256xf32, #tpu.memory_space<vmem>>, %arg9: memref<1x4x256xf32, #tpu.memory_space<vmem>>) attributes {dimension_semantics = [#tpu.dimension_semantics<parallel>], iteration_bounds = array<i64: 2>, scalar_prefetch = 0 : i64, scratch_operands = 0 : i64, tpu.core_type = #tpu.core_type<tc>, window_params = [{transform_indices = @transform_0, window_bounds = array<i64: 1, 4, 256>}, {transform_indices = @transform_1, window_bounds = array<i64: 1, 189, 256>}, {pipeline_mode = #tpu.pipeline_mode<synchronous>, transform_indices = @transform_2, window_bounds = array<i64: 32, 189>}, {pipeline_mode = #tpu.pipeline_mode<synchronous>, transform_indices = @transform_3, window_bounds = array<i64: 32, 1>}, {pipeline_mode = #tpu.pipeline_mode<synchronous>, transform_indices = @transform_4, window_bounds = array<i64: 4, 32>}, {pipeline_mode = #tpu.pipeline_mode<synchronous>, transform_indices = @transform_5, window_bounds = array<i64: 4, 1>}, {pipeline_mode = #tpu.pipeline_mode<synchronous>, transform_indices = @transform_6, window_bounds = array<i64: 4, 1>}, {transform_indices = @transform_7, window_bounds = array<i64: 1, 4, 256>}, {transform_indices = @transform_8, window_bounds = array<i64: 1, 4, 256>}]} {
    %c0 = arith.constant 0 : index
    %c0_0 = arith.constant 0 : index
    %0 = vector.load %arg3[%c0, %c0_0] : memref<32x189xbf16, #tpu.memory_space<vmem>>, vector<32x189xbf16>
    %c0_1 = arith.constant 0 : index
    %c0_2 = arith.constant 0 : index
    %1 = vector.load %arg5[%c0_1, %c0_2] : memref<4x32xbf16, #tpu.memory_space<vmem>>, vector<4x32xbf16>
    %c0_3 = arith.constant 0 : index
    %c0_4 = arith.constant 0 : index
    %2 = vector.load %arg4[%c0_3, %c0_4] : memref<32x1xf32, #tpu.memory_space<vmem>>, vector<32x1xf32>
    %c0_5 = arith.constant 0 : index
    %c0_6 = arith.constant 0 : index
    %3 = vector.load %arg6[%c0_5, %c0_6] : memref<4x1xf32, #tpu.memory_space<vmem>>, vector<4x1xf32>
    %c0_7 = arith.constant 0 : index
    %c0_8 = arith.constant 0 : index
    %4 = vector.load %arg7[%c0_7, %c0_8] : memref<4x1xf32, #tpu.memory_space<vmem>>, vector<4x1xf32>
    %c0_9 = arith.constant 0 : index
    %c0_10 = arith.constant 0 : index
    %c0_11 = arith.constant 0 : index
    %5 = vector.load %arg2[%c0_9, %c0_10, %c0_11] : memref<1x189x256xbf16, #tpu.memory_space<vmem>>, vector<1x189x256xbf16>
    %6 = vector.shape_cast %5 : vector<1x189x256xbf16> to vector<189x256xbf16>
    %cst = arith.constant dense<0.000000e+00> : vector<32x256xf32>
    %7 = tpu.matmul %0, %6, %cst {dimension_numbers = #tpu.dot_dimension_numbers<[1], [0], [0], [1], [0, 0, 1, 1], [], []>} : vector<32x189xbf16>, vector<189x256xbf16>, vector<32x256xf32> -> vector<32x256xf32>
    %8 = vector.broadcast %2 : vector<32x1xf32> to vector<32x256xf32>
    %9 = arith.addf %7, %8 : vector<32x256xf32>
    %cst_12 = arith.constant 0.000000e+00 : f32
    %10 = vector.broadcast %cst_12 : f32 to vector<32x256xf32>
    %11 = arith.maximumf %9, %10 : vector<32x256xf32>
    %12 = arith.truncf %11 : vector<32x256xf32> to vector<32x256xbf16>
    %cst_13 = arith.constant dense<0.000000e+00> : vector<4x256xf32>
    %13 = tpu.matmul %1, %12, %cst_13 {dimension_numbers = #tpu.dot_dimension_numbers<[1], [0], [0], [1], [0, 0, 1, 1], [], []>} : vector<4x32xbf16>, vector<32x256xbf16>, vector<4x256xf32> -> vector<4x256xf32>
    %14 = vector.broadcast %3 : vector<4x1xf32> to vector<4x256xf32>
    %15 = arith.addf %13, %14 : vector<4x256xf32>
    %c0_14 = arith.constant 0 : index
    %c0_15 = arith.constant 0 : index
    %c0_16 = arith.constant 0 : index
    %16 = vector.load %arg1[%c0_14, %c0_15, %c0_16] : memref<1x4x256xf32, #tpu.memory_space<vmem>>, vector<1x4x256xf32>
    %17 = vector.shape_cast %16 : vector<1x4x256xf32> to vector<4x256xf32>
    %18 = vector.broadcast %4 : vector<4x1xf32> to vector<4x256xf32>
    %19 = arith.mulf %18, %15 : vector<4x256xf32>
    %20 = arith.addf %17, %19 : vector<4x256xf32>
    %c0_17 = arith.constant 0 : index
    %c0_18 = arith.constant 0 : index
    %c0_19 = arith.constant 0 : index
    %21 = vector.load %arg8[%c0_17, %c0_18, %c0_19] : memref<1x4x256xf32, #tpu.memory_space<vmem>>, vector<1x4x256xf32>
    %22 = vector.shape_cast %21 : vector<1x4x256xf32> to vector<4x256xf32>
    %23 = vector.shape_cast %20 : vector<4x256xf32> to vector<1x4x256xf32>
    tpu.vector_store %arg8[%c0_17, %c0_18, %c0_19], %23 {strides = array<i32>} : memref<1x4x256xf32, #tpu.memory_space<vmem>>, vector<1x4x256xf32>,
    %c0_20 = arith.constant 0 : index
    %c0_21 = arith.constant 0 : index
    %c0_22 = arith.constant 0 : index
    %24 = vector.load %arg9[%c0_20, %c0_21, %c0_22] : memref<1x4x256xf32, #tpu.memory_space<vmem>>, vector<1x4x256xf32>
    %25 = vector.shape_cast %24 : vector<1x4x256xf32> to vector<4x256xf32>
    %26 = vector.shape_cast %15 : vector<4x256xf32> to vector<1x4x256xf32>
    tpu.vector_store %arg9[%c0_20, %c0_21, %c0_22], %26 {strides = array<i32>} : memref<1x4x256xf32, #tpu.memory_space<vmem>>, vector<1x4x256xf32>,
    return
  }
  func.func @transform_0(%arg0: i32) -> (i32, i32, i32) {
    %c0_i32 = arith.constant 0 : i32
    %c0_i32_0 = arith.constant 0 : i32
    %c0_i32_1 = arith.constant 0 : i32
    return %arg0, %c0_i32, %c0_i32_0 : i32, i32, i32
  }
  func.func @transform_1(%arg0: i32) -> (i32, i32, i32) {
    %c0_i32 = arith.constant 0 : i32
    %c0_i32_0 = arith.constant 0 : i32
    %c0_i32_1 = arith.constant 0 : i32
    return %arg0, %c0_i32, %c0_i32_0 : i32, i32, i32
  }
  func.func @transform_2(%arg0: i32) -> (i32, i32) {
    %c0_i32 = arith.constant 0 : i32
    %c0_i32_0 = arith.constant 0 : i32
    %c0_i32_1 = arith.constant 0 : i32
    return %c0_i32, %c0_i32_0 : i32, i32
  }
  func.func @transform_3(%arg0: i32) -> (i32, i32) {
    %c0_i32 = arith.constant 0 : i32
    %c0_i32_0 = arith.constant 0 : i32
    %c0_i32_1 = arith.constant 0 : i32
    return %c0_i32, %c0_i32_0 : i32, i32
  }
  func.func @transform_4(%arg0: i32) -> (i32, i32) {
    %c0_i32 = arith.constant 0 : i32
    %c0_i32_0 = arith.constant 0 : i32
    %c0_i32_1 = arith.constant 0 : i32
    return %c0_i32, %c0_i32_0 : i32, i32
  }
  func.func @transform_5(%arg0: i32) -> (i32, i32) {
    %c0_i32 = arith.constant 0 : i32
    %c0_i32_0 = arith.constant 0 : i32
    %c0_i32_1 = arith.constant 0 : i32
    return %c0_i32, %c0_i32_0 : i32, i32
  }
  func.func @transform_6(%arg0: i32) -> (i32, i32) {
    %c0_i32 = arith.constant 0 : i32
    %c0_i32_0 = arith.constant 0 : i32
    %c0_i32_1 = arith.constant 0 : i32
    return %c0_i32, %c0_i32_0 : i32, i32
  }
  func.func @transform_7(%arg0: i32) -> (i32, i32, i32) {
    %c0_i32 = arith.constant 0 : i32
    %c0_i32_0 = arith.constant 0 : i32
    %c0_i32_1 = arith.constant 0 : i32
    return %arg0, %c0_i32, %c0_i32_0 : i32, i32, i32
  }
  func.func @transform_8(%arg0: i32) -> (i32, i32, i32) {
    %c0_i32 = arith.constant 0 : i32
    %c0_i32_0 = arith.constant 0 : i32
    %c0_i32_1 = arith.constant 0 : i32
    return %arg0, %c0_i32, %c0_i32_0 : i32, i32, i32
  }
}

</mosaic_0001>

<bundles_post_ra>
// kernel: tpu_custom_call.1
= control target key start
LH: loop header
LB: loop body
LE: loop exit
PB: predicated region body
PF: predicated region fallthrough
CT: control target
= control target key end

     0   :  { %s1295_s0 = inlined_call_operand.vmem [shape: f32[2,4,256], index: 0, kind: input, shape index: {}]   ;;  %s1296_s1 = inlined_call_operand.vmem [shape: bf16[2,189,256], index: 1, kind: input, shape index: {}]   ;;  %s1297_s2 = inlined_call_operand.vmem [shape: bf16[32,189], index: 2, kind: input, shape index: {}]   ;;  %s1298_s3 = inlined_call_operand.vmem [shape: f32[32,1], index: 3, kind: input, shape index: {}]   ;;  %s1299_s4 = inlined_call_operand.vmem [shape: bf16[4,32], index: 4, kind: input, shape index: {}]   ;;  %s1300_s5 = inlined_call_operand.vmem [shape: f32[4,1], index: 5, kind: input, shape index: {}]   ;;  %s1301_s6 = inlined_call_operand.vmem [shape: f32[4,1], index: 6, kind: input, shape index: {}]   ;;  %s1302_s7 = inlined_call_operand.hbm [shape: f32[2,4,256], index: 7, kind: output, shape index: {0}]   ;;  %s1303_s8 = inlined_call_operand.hbm [shape: f32[2,4,256], index: 8, kind: output, shape index: {1}]  }
   0x1   :  { %1305 = sst [smem:[#allocation8_spill]] %s1295_s0 }
   0x2   :  { %1306 = sst [smem:[#allocation9_spill]] %s1296_s1 }
   0x3   :  { %14 = vsyncpa [#allocation3], 0 }
   0x4   :  { %16 = vsyncpa [#allocation3 + $0x1], 0 }
   0x5   :  { %17 = vsyncpa [#allocation5], 0 }
   0x6   :  { %19 = vsyncpa [#allocation5 + $0x1], 0  ;;  %s1098_s27 = smov 0   ;;  %s1100_s28 = smov 0  }
   0x7   :  { %s1102_s29 = smov 0   ;;  %s1104_s30 = smov 0  }
   0x8 LB: > { %s1119_s9 = sadd.s32 4294967295, %s1047_s30   ;;  %s815_s10 = sadd.s32 4294967294, %s1047_s30   ;;  %s1047_s30 = sphi %s1104_s30, %s1316_s30   ;;  %s1043_s29 = sphi %s1102_s29, %s1315_s29   ;;  %s1039_s28 = sphi %s1100_s28, %s1314_s28   ;;  %s1035_s27 = sphi %s1098_s27, %s1313_s27  }
   0x9   : > { %s1123_s11 = sadd.s32 1, %s1047_s30   ;;  %s189_s12 = sadd.s32 1, %s1043_s29 }
   0xa   : > { %s186_s13 = ssub.s32 %s1047_s30, %s1123_s11  ;;  %p199_p0 = scmp.ne.s32.totalorder %s1043_s29, %s1039_s28 }
   0xb   : > { %p187_p1 = scmp.eq.s32.totalorder %s186_s13, 0  ;;  %p200_p2 = scmp.eq.s32.totalorder %s1119_s9, 1 }
   0xc   : > { %p205_p3 = scmp.ne.s32.totalorder %s1039_s28, %s1035_s27  ;;  %p206_p4 = scmp.eq.s32.totalorder %s815_s10, 1 }
   0xd   : > { %s1134_s14 = scalar_select %p187_p1, %s1043_s29, %s189_s12  }
   0xe   : > { %p1136_p5 = por %p200_p2, %p199_p0  ;;  %p1140_p6 = por %p206_p4, %p205_p3 }
   0xf   : > { %p818_p7 = scmp.ge.s32.totalorder %s1047_s30, 1  ;;  %p281_p8 = scmp.lt.s32.totalorder %s1047_s30, 3 }
  0x11   : > { %p282_p9 = pnand %p818_p7, %p281_p8 }
  0x12   : > { %p325_p10 = scmp.lt.s32.totalorder (!%p282_p9), %s1119_s9, 1  ;;  %s1309_s1 = sld [smem:[#allocation9_spill]] (!%p282_p9) }
  0x13   : > { %285 = sbr.rel (%p282_p9) target bundleno = 534 (0x216), region = 48  ;;  %s1216_s20 = sand.u32 (!%p282_p9), 1, %s1039_s28  }
  0x14   : > { %s819_s21 = sshll.u32 (!%p282_p9), %s1216_s20, 3  ;;  %s1304_s23 = sshll.u32 (!%p282_p9), %s1119_s9, 7 }
  0x15   : > { %s1310_s0 = sld [smem:[#allocation8_spill]] (!%p282_p9)  ;;  %s1233_s18 = scalar_lea.vmem (!%p282_p9), [#allocation2], %s819_s21 }
  0x16   : > { %s684_s26 = scalar_lea.sflag (!%p282_p9), [#allocation5], %s1216_s20  ;;  %s1051_s17 = smov (!%p282_p9), [#allocation4]  }
  0x18   : > { %v953_v0 = vld [vmem:[%s1297_s2 + $0x4] ss:$8 sps:$4 sm:$0xff]   ;;  %vm527_vm0 = vcmask 498688   ;;  %s1151_s19 = scalar_select %p325_p10, %s1119_s9, 1  ;;  %v343_v2 = vld [vmem:[%s1298_s3 + $0x10] sm:$0xff]  ;;  %v1049_v3 = vmov 0  }
  0x19   : > { %852 = vmatprep.mubr.msk.bf16.mxu0 %vm527_vm0, %v953_v0  ;;  %v341_v1 = vld [vmem:[%s1298_s3] sm:$0xff]  ;;  %914 = vset.pattern.permute.xlu1 %v1049_v3  ;;  %v342_v4 = vld [vmem:[%s1298_s3 + $0x8] sm:$0xff]  ;;  %v344_v5 = vld [vmem:[%s1298_s3 + $0x18] sm:$0xff]  ;;  %vm534_vm1 = vcmask 1045504   ;;  %vm535_vm2 = vcmask 1046528   ;;  %v1050_v21 = vmov 65535  }
  0x1a   : > { %s866_s24 = smul.u32 192, %s1151_s19  ;;  %913 = vset.pattern.permute.xlu0 %v1049_v3  ;;  %373 = vperm.xlu1 %914, %v341_v1   ;;  %v345_v9 = vld [vmem:[%s1300_s5] sm:$0xf]  ;;  %v536_v22 = vsel %vm534_vm1, 4294967295, %v1050_v21  ;;  %v954_v38 = vld [vmem:[%s1297_s2 + $0x14] ss:$8 sps:$4 sm:$0xff]  }
  0x1b   : > { %383 = vperm.xlu0 %913, %v343_v2   ;;  %650 = vmatprep.mubr.bf16.mxu1 %v1049_v3  ;;  %v346_v11 = vld [vmem:[%s1301_s6] sm:$0xf]  ;;  %v537_v26 = vsel %vm535_vm2, %v536_v22, 0  ;;  %v956_v39 = vld [vmem:[%s1297_s2 + $0x10] ss:$8 sps:$4 sm:$0xff]   ;;  %vm614_vm3 = vcmask 261120  }
  0x1c   : > { %s1164_s10 = scalar_lea.vmem %s1309_s1, %s866_s24  ;;  %v951_v37 = vld [vmem:[%s1297_s2] ss:$8 sps:$4 sm:$0xff]   ;;  %s863_s22 = sshll.u32 %s1151_s19, 3 }
  0x1d   : > { %v915_v6 = vld [vmem:[%s1164_s10 + $0x74] ss:$8 sps:$4 sm:$0xff]   ;;  %v917_v7 = vld [vmem:[%s1164_s10 + $0x70] ss:$8 sps:$4 sm:$0xff]   ;;  %v918_v8 = vld [vmem:[%s1164_s10 + $0x64] ss:$8 sps:$4 sm:$0xff]   ;;  %s329_s13 = scalar_lea.vmem %s1310_s0, %s863_s22 }
  0x1e   : > { %544 = vmatprep.subr.bf16.mxu0 %v915_v6  ;;  %378 = vperm.xlu1 %914, %v342_v4   ;;  %v920_v10 = vld [vmem:[%s1164_s10 + $0x60] ss:$8 sps:$4 sm:$0xff]   ;;  %v921_v12 = vld [vmem:[%s1164_s10 + $0x54] ss:$8 sps:$4 sm:$0xff]   ;;  %v923_v13 = vld [vmem:[%s1164_s10 + $0x50] ss:$8 sps:$4 sm:$0xff]  }
  0x1f   : > { %545 = vmatpush1.bf16.msra.mxu0 %v917_v7  ;;  %388 = vperm.xlu0 %913, %v344_v5   ;;  %v924_v14 = vld [vmem:[%s1164_s10 + $0x44] ss:$8 sps:$4 sm:$0xff]   ;;  %v926_v15 = vld [vmem:[%s1164_s10 + $0x40] ss:$8 sps:$4 sm:$0xff]   ;;  %v927_v16 = vld [vmem:[%s1164_s10 + $0x34] ss:$8 sps:$4 sm:$0xff]  }
  0x20   : > { %546 = vmatprep.subr.bf16.mxu0 %v918_v8  ;;  %v929_v17 = vld [vmem:[%s1164_s10 + $0x30] ss:$8 sps:$4 sm:$0xff]   ;;  %v930_v18 = vld [vmem:[%s1164_s10 + $0x24] ss:$8 sps:$4 sm:$0xff]   ;;  %v932_v19 = vld [vmem:[%s1164_s10 + $0x20] ss:$8 sps:$4 sm:$0xff]  }
  0x21   : > { %v933_v20 = vld [vmem:[%s1164_s10 + $0x14] ss:$8 sps:$4 sm:$0xff]   ;;  %v935_v23 = vld [vmem:[%s1164_s10 + $0x10] ss:$8 sps:$4 sm:$0xff]   ;;  %v936_v24 = vld [vmem:[%s1164_s10 + $0x4] ss:$8 sps:$4 sm:$0xff]  }
  0x22   : > { %662 = vperm.xlu1 %914, %v346_v11   ;;  %v939_v25 = vld [vmem:[%s1164_s10 + $0xb4] ss:$8 sps:$4 sm:$0x7f]   ;;  %v938_v27 = vld [vmem:[%s1164_s10] ss:$8 sps:$4 sm:$0xff]   ;;  %s324_s24 = scalar_lea.vmem [#allocation4], %s819_s21 }
  0x23   : > { %547 = vmatpush1.bf16.msra.mxu0 %v920_v10  ;;  %611 = vperm.xlu0 %913, %v345_v9   ;;  %v941_v28 = vld [vmem:[%s1164_s10 + $0xb0] ss:$8 sps:$4 sm:$0x7f]   ;;  %v542_v29 = vand.u32 %v939_v25, %v537_v26  ;;  %v942_v31 = vld [vmem:[%s1164_s10 + $0xa4] ss:$8 sps:$4 sm:$0xff]   ;;  %s712_s25 = sshll.u32 %s324_s24, 4  ;;  %s1231_s25 = int_to_ptr.vmem [resolvable:$true] %s712_s25 }
  0x24   : > { %548 = vmatprep.subr.bf16.mxu0 %v921_v12  ;;  %v539_v30 = vand.u32 %v941_v28, %v537_v26  ;;  %v944_v32 = vld [vmem:[%s1164_s10 + $0xa0] ss:$8 sps:$4 sm:$0xff]   ;;  %v945_v33 = vld [vmem:[%s1164_s10 + $0x94] ss:$8 sps:$4 sm:$0xff]   ;;  %v947_v34 = vld [vmem:[%s1164_s10 + $0x90] ss:$8 sps:$4 sm:$0xff]  }
  0x25   : > { %v948_v35 = vld [vmem:[%s1164_s10 + $0x84] ss:$8 sps:$4 sm:$0xff]   ;;  %v950_v36 = vld [vmem:[%s1164_s10 + $0x80] ss:$8 sps:$4 sm:$0xff]   ;;  %s1229_s10 = scalar_lea.hbm %s1303_s8, %s1304_s23  ;;  %s957_s12 = scalar_lea.vmem %s1231_s25, 128 }
  0x26   : > { %v340_v8 = vld [vmem:[%s1299_s4] sm:$0x3]  ;;  %p958_p11 = scmp.ne.s32.totalorder %s1231_s25, %s957_s12  ;;  %s961_s19 = sshll.u32 %s1051_s17, 4  ;;  %s962_s19 = int_to_ptr.vmem [resolvable:$false] %s961_s19 }
  0x27   : > { %549 = vmatpush1.bf16.msra.mxu0 %v923_v13  ;;  %s963_s23 = scalar_lea.vmem %s962_s19, 256  ;;  %p964_p0 = scmp.lt.s32.totalorder %s1231_s25, %s962_s19 }
  0x28   : > { %550 = vmatprep.subr.bf16.mxu0 %v924_v14  ;;  %p959_p12 = pnand %p958_p11, %p1136_p5  ;;  %p965_p1 = scmp.lt.s32.totalorder %s963_s23, %s957_s12 }
  0x2a   : > { %p960_p13 = pneg %p959_p12  ;;  %p966_p2 = por %p965_p1, %p964_p0 }
  0x2b   : > { %551 = vmatpush1.bf16.msra.mxu0 %v926_v15 }
  0x2c   : > { %552 = vmatprep.subr.bf16.mxu0 %v927_v16  ;;  %p967_p3 = pnand %p966_p2, %p960_p13 }
  0x2f   : > { %553 = vmatpush1.bf16.msra.mxu0 %v929_v17 }
  0x30   : > { %554 = vmatprep.subr.bf16.mxu0 %v930_v18 }
  0x33   : > { %555 = vmatpush1.bf16.msra.mxu0 %v932_v19 }
  0x34   : > { %556 = vmatprep.subr.bf16.mxu0 %v933_v20  ;;  %v659_v20 = vld [vmem:[%s329_s13] sm:$0xff] }
  0x37   : > { %557 = vmatpush1.bf16.msra.mxu0 %v935_v23 }
  0x38   : > { %558 = vmatprep.subr.bf16.mxu0 %v936_v24 }
  0x3b   : > { %559 = vmatpush1.bf16.msra.mxu0 %v938_v27 }
  0x3c   : > { %568 = vmatprep.subr.bf16.mxu0 %v542_v29 }
  0x3f   : > { %569 = vmatpush2.bf16.msra.mxu0 %v539_v30 }
  0x40   : > { %570 = vmatprep.subr.bf16.mxu0 %v942_v31 }
  0x43   : > { %571 = vmatpush2.bf16.msra.mxu0 %v944_v32 }
  0x44   : > { %572 = vmatprep.subr.bf16.mxu0 %v945_v33 }
  0x47   : > { %573 = vmatpush2.bf16.msra.mxu0 %v947_v34 }
  0x48   : > { %574 = vmatprep.subr.bf16.mxu0 %v948_v35 }
  0x4b   : > { %575 = vmatpush2.bf16.msra.mxu0 %v950_v36 }
  0x4e   : > { %577 = vmatmul.mubr.bf16.vlgmr.msra.gmra.mxu0 %v951_v37 }
  0x4f   : > { %853 = vmatprep.mubr.msk.bf16.mxu0 %vm527_vm0, %v954_v38 }
  0x56   : > { %587 = vmatmul.mubr.bf16.gmra.mxu0 %v956_v39 }
  0x95   : > { %v374_v43 = vpop.permute.xlu1 %373 }
  0x96   : > { %v384_v44 = vpop.permute.xlu0 %383 }
  0x99   : > { %v379_v48 = vpop.permute.xlu1 %378 }
  0x9a   : > { %v389_v49 = vpop.permute.xlu0 %388 }
  0x9d   : > { %v663_v14 = vpop.permute.xlu1 %662 }
  0x9e   : > { %v612_v9 = vpop.permute.xlu0 %611 }
 0x10e   : > { %v578_v40 = vpop.f32.mrf.mxu0 }
 0x10f   : > { %v579_v63 = vadd.f32 %v578_v40, %v374_v43 }
 0x110   : > { %v580_v41 = vpop.f32.mrf.mxu0 }
 0x111   : > { %v581_v56 = vadd.f32 %v580_v41, %v374_v43  ;;  %v597_v6 = vmax.f32 %v579_v63, 0.0 }
 0x112   : > { %v582_v42 = vpop.f32.mrf.mxu0 }
 0x113   : > { %v583_v58 = vadd.f32 %v582_v42, %v379_v48  ;;  %v598_v1 = vmax.f32 %v581_v56, 0.0 }
 0x114   : > { %v584_v45 = vpop.f32.mrf.mxu0 }
 0x115   : > { %v585_v51 = vadd.f32 %v584_v45, %v379_v48  ;;  %v599_v3 = vmax.f32 %v583_v58, 0.0 }
 0x116   : > { %v588_v46 = vpop.f32.mrf.mxu0 }
 0x117   : > { %v589_v54 = vadd.f32 %v588_v46, %v384_v44  ;;  %v600_v60 = vmax.f32 %v585_v51, 0.0  ;;  %v605_v7 = vpack.c.bf16 %v599_v3, %v597_v6 }
 0x118   : > { %v590_v47 = vpop.f32.mrf.mxu0 }
 0x119   : > { %v591_v52 = vadd.f32 %v590_v47, %v384_v44  ;;  %v601_v0 = vmax.f32 %v589_v54, 0.0  ;;  %v606_v5 = vpack.c.bf16 %v600_v60, %v598_v1 }
 0x11a   : > { %v592_v50 = vpop.f32.mrf.mxu0 }
 0x11b   : > { %v593_v53 = vadd.f32 %v592_v50, %v389_v49  ;;  %v602_v61 = vmax.f32 %v591_v52, 0.0 }
 0x11c   : > { %v594_v55 = vpop.f32.mrf.mxu0 }
 0x11d   : > { %v595_v57 = vadd.f32 %v594_v55, %v389_v49  ;;  %v603_v59 = vmax.f32 %v593_v53, 0.0 }
 0x11f   : > { %v604_v62 = vmax.f32 %v595_v57, 0.0  ;;  %v607_v4 = vpack.c.bf16 %v603_v59, %v601_v0 }
 0x121   : > { %v608_v2 = vpack.c.bf16 %v604_v62, %v602_v61 }
 0x123   : > { %630 = vmatprep.subr.bf16.mxu1 %v608_v2 }
 0x124   : > { %631 = vmatpush1.bf16.msra.mxu1 %v607_v4 }
 0x125   : > { %632 = vmatprep.subr.bf16.mxu1 %v606_v5 }
 0x128   : > { %633 = vmatpush1.bf16.msra.mxu1 %v605_v7 }
 0x12b   : > { %854 = vmatmul.mubr.msk.bf16.vlgmr.msra.gmra.mxu1 %vm614_vm3, %v340_v8 }
 0x1eb   : > { %v652_v10 = vpop.f32.mrf.mxu1 }
 0x1ec   : > { %v653_v11 = vadd.f32 %v652_v10, %v612_v9 }
 0x1ed   : > { %v654_v12 = vpop.f32.mrf.mxu1 }
 0x1ee   : > { %v655_v13 = vadd.f32 %v654_v12, %v612_v9  ;;  %v665_v16 = vmul.f32 %v663_v14, %v653_v11 }
 0x1ef   : > { %v656_v15 = vpop.f32.mrf.mxu1 }
 0x1f0   : > { %v666_v17 = vmul.f32 %v663_v14, %v655_v13  ;;  %v675_v18 = vcombine.low %v653_v11, %v655_v13 }
 0x1f1   : > { %v657_v19 = vpop.f32.mrf.mxu1 }
 0x1f2   : > { %v669_v21 = vcombine.low %v665_v16, %v666_v17  ;;  %677 = vst [vmem:[%s324_s24] sm:$0xff] %v675_v18 }
 0x1f3   : > { %970 = shalt.err (!%p967_p3)
}
 0x1f4   : > { %s971_s21 = scalar_lea.hbm %s1229_s10, 128  ;;  %s975_s17 = scalar_lea.hbm %s1303_s8, 256 }
 0x1f5   : > { %p972_p4 = scmp.ne.s32.totalorder %s1229_s10, %s971_s21  ;;  %p976_p9 = scmp.lt.s32.totalorder %s1229_s10, %s1303_s8 }
 0x1f6   : > { %p977_p10 = scmp.lt.s32.totalorder %s975_s17, %s971_s21 }
 0x1f7   : > { %p973_p7 = pnand %p972_p4, %p1136_p5 }
 0x1f8   : > { %p978_p11 = por %p977_p10, %p976_p9 }
 0x1f9   : > { %p974_p8 = pneg %p973_p7 }
 0x1fb   : > { %p979_p12 = pnand %p978_p11, %p974_p8 }
 0x1fd   : > { %982 = shalt.err (!%p979_p12)
}
 0x1fe   : > { %868 = dma.vmem_to_hbm [thread:$0]  (%p1136_p5), %s1231_s25, 128, %s1229_s10, %s684_s26   ;;  %v671_v22 = vadd.f32 %v669_v21, %v659_v20 }
 0x1ff   : > { %s1311_s23 = sshll.u32 %s1119_s9, 7  ;;  %s1312_s22 = sshll.u32 %s1233_s18, 4  ;;  %s699_s22 = int_to_ptr.vmem [resolvable:$true] %s1312_s22 }
 0x200   : > { %s696_s0 = scalar_lea.hbm %s1302_s7, %s1311_s23  ;;  %672 = vst [vmem:[%s1233_s18] sm:$0xff] %v671_v22  ;;  %s679_s21 = scalar_lea.sflag [#allocation3], %s1216_s20 }
 0x201   : > { %s983_s24 = scalar_lea.vmem %s699_s22, 128  ;;  %s1052_s13 = smov [#allocation2]  }
 0x202   : > { %p984_p13 = scmp.ne.s32.totalorder %s699_s22, %s983_s24  ;;  %s987_s17 = sshll.u32 %s1052_s13, 4  ;;  %s988_s17 = int_to_ptr.vmem [resolvable:$false] %s987_s17 }
 0x203   : > { %s989_s1 = scalar_lea.vmem %s988_s17, 256  ;;  %p990_p2 = scmp.lt.s32.totalorder %s699_s22, %s988_s17 }
 0x204   : > { %p985_p0 = pnand %p984_p13, %p1136_p5  ;;  %p991_p3 = scmp.lt.s32.totalorder %s989_s1, %s983_s24 }
 0x206   : > { %p986_p1 = pneg %p985_p0  ;;  %p992_p4 = por %p991_p3, %p990_p2 }
 0x208   : > { %p993_p7 = pnand %p992_p4, %p986_p1 }
 0x20a   : > { %996 = shalt.err (!%p993_p7)
}
 0x20b   : > { %s997_s9 = scalar_lea.hbm %s696_s0, 128  ;;  %s1001_s10 = scalar_lea.hbm %s1302_s7, 256 }
 0x20c   : > { %p998_p8 = scmp.ne.s32.totalorder %s696_s0, %s997_s9  ;;  %p1002_p11 = scmp.lt.s32.totalorder %s696_s0, %s1302_s7 }
 0x20d   : > { %p1003_p12 = scmp.lt.s32.totalorder %s1001_s10, %s997_s9 }
 0x20e   : > { %p999_p9 = pnand %p998_p8, %p1136_p5 }
 0x20f   : > { %p1004_p13 = por %p1003_p12, %p1002_p11 }
 0x210   : > { %p1000_p10 = pneg %p999_p9 }
 0x212   : > { %p1005_p0 = pnand %p1004_p13, %p1000_p10 }
 0x214   : > { %1008 = shalt.err (!%p1005_p0)
}
 0x215   : > { %867 = dma.vmem_to_hbm [thread:$0]  (%p1136_p5), %s699_s22, 128, %s696_s0, %s679_s21  }
 0x216 PF: > { %p878_p1 = scmp.ge.s32.totalorder %s1047_s30, 2  ;;  %s724_s1 = sand.u32 1, %s1035_s27  }
 0x217   : > { %s725_s23 = scalar_lea.sflag [#allocation3], %s724_s1 }
 0x218   : > { %p872_p2 = pnand %p878_p1, %p1140_p6 }
 0x21a   : > { %p873_p3 = pneg %p872_p2 }
 0x21c   : > { %1026 = dma.done.wait (%p873_p3), %s725_s23, 128  }
 0x21d   : > { %1028 = vsyncadd (%p873_p3), %s725_s23, 4294967168  ;;  %s734_s12 = scalar_lea.sflag [#allocation5], %s724_s1 }
 0x21e   : > { %1030 = dma.done.wait (%p873_p3), %s734_s12, 128  }
 0x21f   : > { %1032 = vsyncadd (%p873_p3), %s734_s12, 4294967168  ;;  %p22_p5 = scmp.ge.s32.totalorder %s1123_s11, 4   ;;  %s1313_s27 = smov %s1039_s28 }
 0x220   : > { %s1314_s28 = smov %s1043_s29  ;;  %s1315_s29 = smov %s1134_s14 }
 0x221   : > { %s1316_s30 = smov %s1123_s11  ;;  %24 = sbr.rel (!%p22_p5) target bundleno = 8 (0x8), region = 103 }
 0x226   :  { %739 = vsyncpa [#allocation3], 1 }
 0x227   :  { %741 = vsyncpa [#allocation3 + $0x1], 1 }
 0x228   :  { %742 = vsyncpa [#allocation5], 1 }
 0x229   :  { %744 = vsyncpa [#allocation5 + $0x1], 1 }

</bundles_post_ra>
